<compile_context>
chip_gen: v7x
topology: tpu7x:2x2x1
jax: 0.10.0
libtpu: 0.0.40
codegen_flags: <defaults>
</compile_context>

<pallas_src>
import functools

import jax
import jax.numpy as jnp
from jax import lax
from jax.experimental import pallas as pl
from jax.experimental.pallas import tpu as pltpu


def _round_up(x, m):
    return (x + m - 1) // m * m


# ----------------------------------------------------------------------------
# Fused kernel: one matmul over the concatenated weight slab, then a
# per-segment activation epilogue selected with lane-index masks.
# ----------------------------------------------------------------------------
def _fused_parallel_kernel(x_ref, w_ref, b_ref, o_ref, *, segments):
    # x: [TB, Din] (bf16), w: [Din, Npad] (bf16), b: [1, Npad] (f32)
    acc = jnp.dot(x_ref[...], w_ref[...], preferred_element_type=jnp.float32)
    acc = acc + b_ref[...].astype(jnp.float32)

    col = lax.broadcasted_iota(jnp.int32, acc.shape, 1)
    out = acc
    for start, size, act in segments:          # static Python loop (unrolled)
        if act == "linear":
            continue
        if act == "relu":
            v = jnp.maximum(acc, 0.0)          # VPU slot
        elif act == "tanh":
            v = jnp.tanh(acc)                  # EUP slot (free next to MXU/store)
        else:
            raise ValueError(f"unknown activation: {act}")
        mask = (col >= start) & (col < start + size)
        out = jnp.where(mask, v, out)

    o_ref[...] = out.astype(o_ref.dtype)


# ----------------------------------------------------------------------------
# ParallelNetwork forward: one pallas_call for all branches, then split.
# ----------------------------------------------------------------------------
def parallel_network_forward(x, params, *, compute_dtype=jnp.bfloat16,
                             out_dtype=jnp.float32, tb_max=512):
    B, d_in = x.shape

    # --- fuse branch parameters along the output (lane) axis ----------------
    names, segments, ws, bs = [], [], [], []
    start = 0
    for name, (w, b, act) in params.items():
        assert w.shape[0] == d_in
        d_out = w.shape[1]
        names.append(name)
        segments.append((start, d_out, act))
        ws.append(w)
        bs.append(b.reshape(1, d_out))
        start += d_out
    n_total = start
    n_pad = _round_up(n_total, 128)        # lane-dense output -> unmasked vst

    w_cat = jnp.concatenate(ws, axis=1)
    b_cat = jnp.concatenate(bs, axis=1)
    if n_pad != n_total:
        w_cat = jnp.pad(w_cat, ((0, 0), (0, n_pad - n_total)))
        b_cat = jnp.pad(b_cat, ((0, 0), (0, n_pad - n_total)))

    # bf16 MXU inputs (native on v6e/v7x; still fine on v5e), f32 bias/acc.
    x_c = x.astype(compute_dtype)
    w_c = w_cat.astype(compute_dtype)
    b_c = b_cat.astype(jnp.float32)

    # --- batch tiling: 16-row sublane tiles, pipelined "parallel" axis ------
    tb = min(tb_max, _round_up(B, 16))
    b_pad = _round_up(B, tb)
    if b_pad != B:
        x_c = jnp.pad(x_c, ((0, b_pad - B), (0, 0)))
    nb = b_pad // tb

    n_tanh = sum(s for _, s, a in segments if a == "tanh")
    cost = pl.CostEstimate(
        flops=2 * b_pad * d_in * n_pad,
        transcendentals=b_pad * n_tanh,
        bytes_accessed=(x_c.size * x_c.dtype.itemsize
                        + w_c.size * w_c.dtype.itemsize
                        + b_c.size * 4
                        + b_pad * n_pad * jnp.dtype(out_dtype).itemsize),
    )

    kernel = functools.partial(_fused_parallel_kernel,
                               segments=tuple(segments))
    fused = pl.pallas_call(
        kernel,
        out_shape=jax.ShapeDtypeStruct((b_pad, n_pad), out_dtype),
        grid=(nb,),
        in_specs=[
            pl.BlockSpec((tb, d_in), lambda i: (i, 0)),      # x tile
            pl.BlockSpec((d_in, n_pad), lambda i: (0, 0)),   # fused weights
            pl.BlockSpec((1, n_pad), lambda i: (0, 0)),      # fused bias
        ],
        out_specs=pl.BlockSpec((tb, n_pad), lambda i: (i, 0)),
        compiler_params=pltpu.CompilerParams(
            dimension_semantics=("parallel",),
        ),
        cost_estimate=cost,
    )(x_c, w_c, b_c)

    # --- split the fused slab back into per-branch outputs ------------------
    results = {}
    for name, (seg_start, seg_size, _act) in zip(names, segments):
        results[name] = fused[:B, seg_start:seg_start + seg_size]
    return results


def make_params(key, d_in, branch_cfg):
    """Deterministic parameter init (Kaiming-ish scaling); no Python hash()."""
    params = {}
    for idx, (name, (d_out, act)) in enumerate(branch_cfg.items()):
        kw, kb = jax.random.split(jax.random.fold_in(key, idx))
        w = jax.random.normal(kw, (d_in, d_out), jnp.float32) / jnp.sqrt(d_in)
        b = jax.random.normal(kb, (1, d_out), jnp.float32) * 0.01
        params[name] = (w, b, act)
    return params


if __name__ == "__main__":
    B, D_IN = 8, 32
    branch_cfg = {
        "head_a": (64, "relu"),
        "head_b": (48, "tanh"),
    }

    root = jax.random.PRNGKey(0)
    kx, kp = jax.random.split(root)
    x = jax.random.normal(kx, (B, D_IN), jnp.float32)
    params = make_params(kp, D_IN, branch_cfg)

    out = parallel_network_forward(x, params)
    out = jax.block_until_ready(out)

    # Reference in f32 on the bf16-quantized inputs the kernel actually saw.
    x_q = x.astype(jnp.bfloat16).astype(jnp.float32)
    for name, (w, b, act) in params.items():
        w_q = w.astype(jnp.bfloat16).astype(jnp.float32)
        ref = x_q @ w_q + b
        ref = jnp.maximum(ref, 0.0) if act == "relu" else jnp.tanh(ref)
        assert out[name].shape == ref.shape, name
        assert jnp.allclose(out[name], ref, atol=1e-3, rtol=1e-3), name

    print("KERNEL_OK")
</pallas_src>

<mosaic_0001>
module attributes {stable_mosaic.version = 11 : i64} {
  func.func @_fused_parallel_kernel(%arg0: i32, %arg1: memref<16x32xbf16, #tpu.memory_space<vmem>>, %arg2: memref<32x128xbf16, #tpu.memory_space<vmem>>, %arg3: memref<1x128xf32, #tpu.memory_space<vmem>>, %arg4: memref<16x128xf32, #tpu.memory_space<vmem>>) attributes {dimension_semantics = [#tpu.dimension_semantics<parallel>], iteration_bounds = array<i64: 1>, scalar_prefetch = 0 : i64, scratch_operands = 0 : i64, tpu.core_type = #tpu.core_type<tc>, window_params = [{transform_indices = @transform_0, window_bounds = array<i64: 16, 32>}, {pipeline_mode = #tpu.pipeline_mode<synchronous>, transform_indices = @transform_1, window_bounds = array<i64: 32, 128>}, {pipeline_mode = #tpu.pipeline_mode<synchronous>, transform_indices = @transform_2, window_bounds = array<i64: 1, 128>}, {transform_indices = @transform_3, window_bounds = array<i64: 16, 128>}]} {
    %c0 = arith.constant 0 : index
    %c0_0 = arith.constant 0 : index
    %0 = vector.load %arg1[%c0, %c0_0] : memref<16x32xbf16, #tpu.memory_space<vmem>>, vector<16x32xbf16>
    %c0_1 = arith.constant 0 : index
    %c0_2 = arith.constant 0 : index
    %1 = vector.load %arg2[%c0_1, %c0_2] : memref<32x128xbf16, #tpu.memory_space<vmem>>, vector<32x128xbf16>
    %cst = arith.constant dense<0.000000e+00> : vector<16x128xf32>
    %2 = tpu.matmul %0, %1, %cst {dimension_numbers = #tpu.dot_dimension_numbers<[1], [0], [0], [1], [0, 0, 1, 1], [], []>} : vector<16x32xbf16>, vector<32x128xbf16>, vector<16x128xf32> -> vector<16x128xf32>
    %c0_3 = arith.constant 0 : index
    %c0_4 = arith.constant 0 : index
    %3 = vector.load %arg3[%c0_3, %c0_4] : memref<1x128xf32, #tpu.memory_space<vmem>>, vector<1x128xf32>
    %4 = vector.broadcast %3 : vector<1x128xf32> to vector<16x128xf32>
    %5 = arith.addf %2, %4 : vector<16x128xf32>
    %6 = tpu.iota {dimensions = array<i32: 1>} : vector<16x128xi32>
    %cst_5 = arith.constant 0.000000e+00 : f32
    %7 = vector.broadcast %cst_5 : f32 to vector<16x128xf32>
    %8 = arith.maximumf %5, %7 : vector<16x128xf32>
    %c0_i32 = arith.constant 0 : i32
    %9 = vector.broadcast %c0_i32 : i32 to vector<16x128xi32>
    %10 = arith.cmpi sge, %6, %9 : vector<16x128xi32>
    %c64_i32 = arith.constant 64 : i32
    %11 = vector.broadcast %c64_i32 : i32 to vector<16x128xi32>
    %12 = arith.cmpi slt, %6, %11 : vector<16x128xi32>
    %13 = arith.andi %10, %12 : vector<16x128xi1>
    %14 = arith.select %13, %8, %5 : vector<16x128xi1>, vector<16x128xf32>
    %15 = math.tanh %5 : vector<16x128xf32>
    %c64_i32_6 = arith.constant 64 : i32
    %16 = vector.broadcast %c64_i32_6 : i32 to vector<16x128xi32>
    %17 = arith.cmpi sge, %6, %16 : vector<16x128xi32>
    %c112_i32 = arith.constant 112 : i32
    %18 = vector.broadcast %c112_i32 : i32 to vector<16x128xi32>
    %19 = arith.cmpi slt, %6, %18 : vector<16x128xi32>
    %20 = arith.andi %17, %19 : vector<16x128xi1>
    %21 = arith.select %20, %15, %14 : vector<16x128xi1>, vector<16x128xf32>
    %c0_7 = arith.constant 0 : index
    %c0_8 = arith.constant 0 : index
    %22 = vector.load %arg4[%c0_7, %c0_8] : memref<16x128xf32, #tpu.memory_space<vmem>>, vector<16x128xf32>
    tpu.vector_store %arg4[%c0_7, %c0_8], %21 {strides = array<i32>} : memref<16x128xf32, #tpu.memory_space<vmem>>, vector<16x128xf32>,
    return
  }
  func.func @transform_0(%arg0: i32) -> (i32, i32) {
    %c0_i32 = arith.constant 0 : i32
    %c0_i32_0 = arith.constant 0 : i32
    return %arg0, %c0_i32 : i32, i32
  }
  func.func @transform_1(%arg0: i32) -> (i32, i32) {
    %c0_i32 = arith.constant 0 : i32
    %c0_i32_0 = arith.constant 0 : i32
    %c0_i32_1 = arith.constant 0 : i32
    return %c0_i32, %c0_i32_0 : i32, i32
  }
  func.func @transform_2(%arg0: i32) -> (i32, i32) {
    %c0_i32 = arith.constant 0 : i32
    %c0_i32_0 = arith.constant 0 : i32
    %c0_i32_1 = arith.constant 0 : i32
    return %c0_i32, %c0_i32_0 : i32, i32
  }
  func.func @transform_3(%arg0: i32) -> (i32, i32) {
    %c0_i32 = arith.constant 0 : i32
    %c0_i32_0 = arith.constant 0 : i32
    return %arg0, %c0_i32 : i32, i32
  }
}

</mosaic_0001>

<bundles_post_ra>
// kernel: tpu_custom_call.1
= control target key start
LH: loop header
LB: loop body
LE: loop exit
PB: predicated region body
PF: predicated region fallthrough
CT: control target
= control target key end

     0   :  { %8 = vsyncpa [#allocation3], 0  ;;  %s327_s0 = inlined_call_operand.hbm [shape: bf16[16,32], index: 0, kind: input, shape index: {}]   ;;  %s328_s1 = inlined_call_operand.hbm [shape: bf16[32,128], index: 1, kind: input, shape index: {}]   ;;  %s329_s2 = inlined_call_operand.vmem [shape: f32[1,128], index: 2, kind: input, shape index: {}]   ;;  %s330_s3 = inlined_call_operand.hbm [shape: f32[16,128], index: 3, kind: output, shape index: {}]  }
   0x1   :  { %9 = vsyncpa [#allocation6], 0 }
   0x2   :  { %10 = vsyncpa [#allocation4], 0  ;;  %s259_s12 = smov [#allocation2]   ;;  %s187_s16 = scalar_lea.hbm %s327_s0, 128 }
   0x3   :  { %s16_s13 = sshll.u32 %s259_s12, 4  ;;  %p188_p0 = scmp.ne.s32.totalorder %s327_s0, %s187_s16  ;;  %s17_s13 = int_to_ptr.vmem [resolvable:$true] %s16_s13 }
   0x4   :  { %p191_p1 = scmp.lt.u32.totalorder %s187_s16, %s327_s0 }
   0x6   :  { %p193_p2 = pnand %p191_p1, %p188_p0 }
   0x8   :  { %196 = shalt.err (!%p193_p2)
}
   0x9   :  { %s197_s21 = scalar_lea.vmem %s17_s13, 128  ;;  %p202_p4 = scmp.lt.s32.totalorder %s17_s13, %s17_s13 }
   0xa   :  { %p198_p3 = scmp.ne.s32.totalorder %s17_s13, %s197_s21  ;;  %p203_p5 = scmp.lt.s32.totalorder %s197_s21, %s197_s21 }
   0xc   :  { %p204_p6 = por %p203_p5, %p202_p4 }
   0xe   :  { %p205_p7 = pnand %p204_p6, %p198_p3 }
  0x10   :  { %208 = shalt.err (!%p205_p7)
}
  0x11   :  { %s260_s22 = smov 64   ;;  %s261_s23 = smov 4  }
  0x12   :  { %22 = dma.hbm_to_vmem [thread:$0]  %s327_s0, 128, %s17_s13, [#allocation3], %s260_s22, %s260_s22, %s261_s23  }
  0x13   :  { %s262_s26 = smov [#allocation5]   ;;  %s209_s30 = scalar_lea.hbm %s328_s1, 256 }
  0x14   :  { %s28_s27 = sshll.u32 %s262_s26, 4  ;;  %p210_p8 = scmp.ne.s32.totalorder %s328_s1, %s209_s30  ;;  %s29_s27 = int_to_ptr.vmem [resolvable:$true] %s28_s27 }
  0x15   :  { %p213_p9 = scmp.lt.u32.totalorder %s209_s30, %s328_s1 }
  0x17   :  { %p215_p10 = pnand %p213_p9, %p210_p8 }
  0x19   :  { %218 = shalt.err (!%p215_p10)
}
  0x1a   :  { %s219_s8 = scalar_lea.vmem %s29_s27, 256  ;;  %p224_p12 = scmp.lt.s32.totalorder %s29_s27, %s29_s27 }
  0x1b   :  { %p220_p11 = scmp.ne.s32.totalorder %s29_s27, %s219_s8  ;;  %p225_p13 = scmp.lt.s32.totalorder %s219_s8, %s219_s8 }
  0x1d   :  { %p226_p0 = por %p225_p13, %p224_p12 }
  0x1f   :  { %p227_p1 = pnand %p226_p0, %p220_p11 }
  0x21   :  { %230 = shalt.err (!%p227_p1)
}
  0x22   :  { %34 = dma.hbm_to_vmem [thread:$0]  %s328_s1, 256, %s29_s27, [#allocation6], %s260_s22, %s260_s22, %s261_s23  }
  0x23   :  { %253 = dma.done.wait [#allocation3], 128  }
  0x24   :  { %254 = vsyncadd [#allocation3], 4294967168 }
  0x25   :  { %255 = dma.done.wait [#allocation6], 256  }
  0x26   :  { %256 = vsyncadd [#allocation6], 4294967040  ;;  %v263_v0 = vmov 0.0   ;;  %vm264_vm0 = vmmov 0   ;;  %v180_v1 = vld [vmem:[#allocation5] sm:$0xff]   ;;  %v181_v2 = vld [vmem:[#allocation5 + $0x8] sm:$0xff]   ;;  %v119_v8 = vlaneseq }
  0x27   :  { %163 = vmatprep.subr.bf16.mxu0 %v263_v0  ;;  %167 = vmatprep.mubr.msk.bf16.mxu0 %vm264_vm0, %v263_v0  ;;  %v182_v3 = vld [vmem:[#allocation2] sm:$0xff]   ;;  %vm74_vm1 = vcmask 261120   ;;  %s265_s1 = smov [#allocation7]  }
  0x28   :  { %164 = vmatpush3.bf16.msra.mxu0 %v180_v1  ;;  %v155_v4 = vld [vmem:[%s329_s2] ss:$0 sm:$0xff]  ;;  %v120_v12 = vand.u32 127, %v119_v8  ;;  %s142_s12 = sshll.u32 %s265_s1, 4  ;;  %s143_s12 = int_to_ptr.vmem [resolvable:$true] %s142_s12 }
  0x29   :  { %165 = vmatprep.subr.bf16.mxu0 %v263_v0  ;;  %s231_s2 = scalar_lea.vmem %s143_s12, 256  ;;  %p236_p3 = scmp.lt.s32.totalorder %s143_s12, %s143_s12 }
  0x2a   :  { %vm130_vm2 = vcmp.ge.s32.totalorder %v120_v12, 64  ;;  %vm131_vm3 = vcmp.lt.s32.totalorder %v120_v12, 112  ;;  %vm124_vm4 = vcmp.lt.s32.totalorder %v120_v12, 64  ;;  %p232_p2 = scmp.ne.s32.totalorder %s143_s12, %s231_s2  ;;  %p237_p4 = scmp.lt.s32.totalorder %s231_s2, %s231_s2 }
  0x2b   :  { %vm132_vm5 = vmand %vm130_vm2, %vm131_vm3 }
  0x2c   :  { %166 = vmatpush3.bf16.msra.mxu0 %v181_v2  ;;  %p238_p5 = por %p237_p4, %p236_p3 }
  0x2e   :  { %p239_p6 = pnand %p238_p5, %p232_p2 }
  0x2f   :  { %168 = vmatmul.mubr.msk.bf16.vlgmr.msra.gmra.mrb[0].mxu0 %vm74_vm1, %v182_v3 }
 0x102   :  { %v112_v5 = vpop.f32.mrb[0].mxu0 }
 0x103   :  { %v113_v6 = vadd.f32 %v155_v4, %v112_v5  ;;  %v169_v7 = vpop.f32.mrb[1].mxu0 }
 0x104   :  { %v115_v9 = vpop.f32.mrb[2].mxu0 }
 0x105   :  { %183 = vtanh.f32 %v113_v6  ;;  %v116_v10 = vadd.f32 %v155_v4, %v115_v9  ;;  %v170_v11 = vpop.f32.mrb[3].mxu0  ;;  %v121_v13 = vmax.f32 %v113_v6, 0.0 }
 0x107   :  { %185 = vtanh.f32 %v116_v10  ;;  %v122_v14 = vmax.f32 %v116_v10, 0.0  ;;  %v126_v16 = vsel %vm124_vm4, %v121_v13, %v113_v6 }
 0x109   :  { %v127_v19 = vsel %vm124_vm4, %v122_v14, %v116_v10 }
 0x10f   :  { %v184_v15 = vpop.eup %183 }
 0x110   :  { %v133_v17 = vsel %vm132_vm5, %v184_v15, %v126_v16 }
 0x111   :  { %v186_v18 = vpop.eup %185  ;;  %135 = vst [vmem:[#allocation7] sm:$0xff] %v133_v17 }
 0x112   :  { %v134_v20 = vsel %vm132_vm5, %v186_v18, %v127_v19 }
 0x113   :  { %136 = vst [vmem:[#allocation7 + $0x8] sm:$0xff] %v134_v20 }
 0x114   :  { %242 = shalt.err (!%p239_p6)
}
 0x115   :  { %s243_s15 = scalar_lea.hbm %s330_s3, 256 }
 0x116   :  { %p244_p7 = scmp.ne.s32.totalorder %s330_s3, %s243_s15  ;;  %p247_p8 = scmp.lt.u32.totalorder %s243_s15, %s330_s3 }
 0x118   :  { %p249_p9 = pnand %p247_p8, %p244_p7 }
 0x11a   :  { %252 = shalt.err (!%p249_p9)
}
 0x11b   :  { %s266_s20 = smov 128   ;;  %s267_s21 = smov 8  }
 0x11c   :  { %148 = dma.vmem_to_hbm [thread:$0]  %s143_s12, 256, %s330_s3, [#allocation4], %s266_s20, %s266_s20, %s267_s21  }
 0x11d   :  { %257 = dma.done.wait [#allocation4], 256  }
 0x11e   :  { %258 = vsyncadd [#allocation4], 4294967040 }
 0x11f   :  { %152 = vsyncpa [#allocation3], 1 }
 0x120   :  { %153 = vsyncpa [#allocation6], 1 }
 0x121   :  { %154 = vsyncpa [#allocation4], 1 }

</bundles_post_ra>
